<compile_context>
chip_gen: v5e
topology: v5e:2x2
jax: 0.10.0
libtpu: 0.0.40
codegen_flags: <defaults>
</compile_context>

<pallas_src>
import jax
import jax.numpy as jnp
from jax.experimental import pallas as pl
from jax.experimental.pallas import tpu as pltpu

MIN_OUT = 4
MAX_OUT = 64


def _alias_identity_kernel(v_ref, e_ref, x_ref, vo_ref, eo_ref, xo_ref):
    # Outputs are aliased to the inputs via input_output_aliases, so the
    # identity is realized with zero data movement.  Nothing to do here.
    del v_ref, e_ref, x_ref, vo_ref, eo_ref, xo_ref


def module_forward(v, e, x, config=None):
    """Identity forward of the aperol base Module, as a zero-copy Pallas call."""
    del config  # Present per the Module contract; unused by the base forward.

    out_shapes = (
        jax.ShapeDtypeStruct(v.shape, v.dtype),
        jax.ShapeDtypeStruct(e.shape, e.dtype),
        jax.ShapeDtypeStruct(x.shape, x.dtype),
    )

    return pl.pallas_call(
        _alias_identity_kernel,
        out_shape=out_shapes,
        in_specs=[
            pl.BlockSpec(memory_space=pl.ANY),
            pl.BlockSpec(memory_space=pl.ANY),
            pl.BlockSpec(memory_space=pl.ANY),
        ],
        out_specs=(
            pl.BlockSpec(memory_space=pl.ANY),
            pl.BlockSpec(memory_space=pl.ANY),
            pl.BlockSpec(memory_space=pl.ANY),
        ),
        # v -> v_out, e -> e_out, x -> x_out: outputs alias inputs, no copy.
        input_output_aliases={0: 0, 1: 1, 2: 2},
        compiler_params=pltpu.CompilerParams(has_side_effects=True),
        cost_estimate=pl.CostEstimate(flops=0, transcendentals=0, bytes_accessed=0),
    )(v, e, x)


if __name__ == "__main__":
    key = jax.random.PRNGKey(0)
    kv, ke, kx = jax.random.split(key, 3)

    num_nodes, num_edges, hidden = 8, 16, 32
    v = jax.random.normal(kv, (num_nodes, hidden), dtype=jnp.float32)
    e = jax.random.normal(ke, (num_edges, hidden), dtype=jnp.float32)
    x = jax.random.normal(kx, (num_nodes, 3, hidden), dtype=jnp.float32)

    # Inputs are donated (aliased into the outputs), so capture host-side
    # reference copies for the correctness check before calling.
    v_np = jax.device_get(v)
    e_np = jax.device_get(e)
    x_np = jax.device_get(x)

    fwd = jax.jit(module_forward, donate_argnums=(0, 1, 2))
    v_out, e_out, x_out = fwd(v, e, x)
    jax.block_until_ready((v_out, e_out, x_out))

    assert v_out.shape == v_np.shape and v_out.dtype == v_np.dtype
    assert e_out.shape == e_np.shape and e_out.dtype == e_np.dtype
    assert x_out.shape == x_np.shape and x_out.dtype == x_np.dtype
    assert jnp.allclose(v_out, v_np)
    assert jnp.allclose(e_out, e_np)
    assert jnp.allclose(x_out, x_np)

    print("KERNEL_OK")
</pallas_src>

<mosaic_0001>
module attributes {stable_mosaic.version = 11 : i64} {
  func.func @_alias_identity_kernel(%arg0: memref<8x32xf32, #tpu.memory_space<any>>, %arg1: memref<16x32xf32, #tpu.memory_space<any>>, %arg2: memref<8x3x32xf32, #tpu.memory_space<any>>, %arg3: memref<8x32xf32, #tpu.memory_space<any>>, %arg4: memref<16x32xf32, #tpu.memory_space<any>>, %arg5: memref<8x3x32xf32, #tpu.memory_space<any>>) attributes {dimension_semantics = [], scalar_prefetch = 0 : i64, scratch_operands = 0 : i64, tpu.core_type = #tpu.core_type<tc>} {
    return
  }
}

</mosaic_0001>

<bundles_post_ra>
// kernel: module_forward.1
= control target key start
LH: loop header
LB: loop body
LE: loop exit
PB: predicated region body
PF: predicated region fallthrough
CT: control target
= control target key end

     0   :  { %s41_s0 = inlined_call_operand.vmem [shape: f32[8,32], index: 0, kind: input, shape index: {}, may-alias: {0,3}]   ;;  %s42_s1 = inlined_call_operand.vmem [shape: f32[16,32], index: 1, kind: input, shape index: {}, may-alias: {1,4}]   ;;  %s43_s2 = inlined_call_operand.vmem [shape: f32[8,3,32], index: 2, kind: input, shape index: {}, may-alias: {2,5}]   ;;  %s44_s3 = inlined_call_operand.vmem [shape: f32[8,32], index: 3, kind: output, shape index: {0}, may-alias: {0,3}]   ;;  %s45_s4 = inlined_call_operand.vmem [shape: f32[16,32], index: 4, kind: output, shape index: {1}, may-alias: {1,4}]   ;;  %s46_s5 = inlined_call_operand.vmem [shape: f32[8,3,32], index: 5, kind: output, shape index: {2}, may-alias: {2,5}]  }

</bundles_post_ra>
